<compile_context>
chip_gen: v7x
topology: tpu7x:2x2x1
jax: 0.10.0
libtpu: 0.0.40
codegen_flags: <defaults>
</compile_context>

<pallas_src>
import functools

import jax
import jax.numpy as jnp
from jax.experimental import pallas as pl
from jax.experimental.pallas import tpu as pltpu


def _cdiv(a, b):
    return -(-a // b)


def _round_up(a, b):
    return _cdiv(a, b) * b


def _per_row_loss(dist, lab, margin_pos, margin_neg):
    # Exact PyTorch formula (valid for soft / float labels as well).
    return (lab * jnp.maximum(dist - margin_pos, 0.0)
            + (1.0 - lab) * jnp.maximum(margin_neg - dist, 0.0))


def _single_pass_kernel(x_ref, y_ref, label_ref, out_ref, *,
                        margin_pos, margin_neg, inv_b, true_b, tile_b,
                        mask_rows):
    # grid = (nb,): the whole feature dim is in this block -> no reduction
    # grid axis, no scratch, no pl.when phases.
    diff = x_ref[...].astype(jnp.float32) - y_ref[...].astype(jnp.float32)
    sq_sum = jnp.sum(diff * diff, axis=1, keepdims=True)            # (TILE_B, 1)
    dist = jnp.sqrt(sq_sum + 1e-12)
    lab = label_ref[...].astype(jnp.float32)                        # (TILE_B, 1)
    per_row = _per_row_loss(dist, lab, margin_pos, margin_neg)
    if mask_rows:
        # Rows that exist only because the last batch block runs past B.
        row = (pl.program_id(0) * tile_b
               + jax.lax.broadcasted_iota(jnp.int32, per_row.shape, 0))
        per_row = jnp.where(row < true_b, per_row, 0.0)
    partial = jnp.sum(per_row) * inv_b
    out_ref[...] = jnp.broadcast_to(partial, out_ref.shape).astype(jnp.float32)


def _multi_pass_kernel(x_ref, y_ref, label_ref, out_ref, acc_ref, *,
                       margin_pos, margin_neg, inv_b, true_b, true_d,
                       tile_b, tile_d, mask_rows, mask_cols):
    # grid = (nb, nk); feature (reduction) axis last, "arbitrary".
    # IMPORTANT: program_id / num_programs are bound at the kernel top level
    # only; their *values* are captured by the pl.when closures below.
    k = pl.program_id(1)
    nk = pl.num_programs(1)
    row_base = pl.program_id(0) * tile_b

    @pl.when(k == 0)
    def _():
        acc_ref[...] = jnp.zeros_like(acc_ref)

    diff = x_ref[...].astype(jnp.float32) - y_ref[...].astype(jnp.float32)
    if mask_cols:
        # Mask out-of-range feature columns BEFORE accumulation so garbage in
        # the OOB tail of the last feature block can never pollute valid rows.
        col = k * tile_d + jax.lax.broadcasted_iota(jnp.int32, diff.shape, 1)
        diff = jnp.where(col < true_d, diff, 0.0)
    d2 = diff * diff
    # Fold the TILE_D lanes into a narrow (TILE_B, 128) accumulator using
    # vreg-aligned 128-wide slices: pure VPU work, one acc read-modify-write
    # per grid step, and TILE_B*TILE_D*4 bytes of VMEM freed for input tiles.
    part = d2[:, 0:128]
    for c in range(1, tile_d // 128):
        part = part + d2[:, c * 128:(c + 1) * 128]
    acc_ref[...] += part

    @pl.when(k == nk - 1)
    def _():
        sq_sum = jnp.sum(acc_ref[...], axis=1, keepdims=True)       # (TILE_B, 1)
        dist = jnp.sqrt(sq_sum + 1e-12)
        lab = label_ref[...].astype(jnp.float32)
        per_row = _per_row_loss(dist, lab, margin_pos, margin_neg)
        if mask_rows:
            row = row_base + jax.lax.broadcasted_iota(jnp.int32, per_row.shape, 0)
            per_row = jnp.where(row < true_b, per_row, 0.0)
        partial = jnp.sum(per_row) * inv_b
        out_ref[...] = jnp.broadcast_to(partial, out_ref.shape).astype(jnp.float32)


def _select_tiles(B, D, itemsize, max_tile_bytes, tile_b, tile_d):
    """Choose (TILE_B, TILE_D, single_pass) for a memory-bound kernel."""
    if tile_d is None:
        if 8 * D * itemsize <= max_tile_bytes:
            tile_d = D                                # single feature pass
        else:
            tile_d = min(2048, _round_up(D, 128))     # multi-pass, lane-aligned
    single_pass = tile_d >= D
    if single_pass:
        tile_d = D
    else:
        assert tile_d % 128 == 0, "feature tile must be a multiple of 128"

    if tile_b is None:
        if B <= 8:
            tile_b = B                                # full (possibly <8) dim
        else:
            row_bytes = tile_d * itemsize
            cap = max(8, min(1024, (max_tile_bytes // row_bytes) // 8 * 8))
            tile_b = min(cap, _round_up(B, 8))
            if tile_b >= B:
                # >= 2 batch tiles so the "parallel" axis spans both
                # TensorCores on dual-core chips (v7x).
                tile_b = _round_up(_cdiv(B, 2), 8)
    else:
        assert tile_b == B or tile_b % 8 == 0
    return tile_b, tile_d, single_pass


def contrastive_loss(x, y, label, *, margin_pos, margin_neg,
                     tile_b=None, tile_d=None,
                     max_tile_bytes=4 * 1024 * 1024):
    """x, y: (B, D) float arrays (any float dtype); label: (B,) -> scalar f32."""
    assert margin_pos <= margin_neg          # mirrors the reference __init__
    assert x.ndim == 2
    B, D = x.shape
    assert y.shape == (B, D)

    label2d = jnp.reshape(label, (B, 1))
    itemsize = x.dtype.itemsize

    tile_b, tile_d, single_pass = _select_tiles(B, D, itemsize, max_tile_bytes,
                                                tile_b, tile_d)
    nb = _cdiv(B, tile_b)
    mask_rows = nb * tile_b != B

    common = dict(margin_pos=float(margin_pos), margin_neg=float(margin_neg),
                  inv_b=1.0 / B, true_b=B, tile_b=tile_b, mask_rows=mask_rows)
    compiler_params = pltpu.CompilerParams(
        dimension_semantics=("parallel",) if single_pass
        else ("parallel", "arbitrary"),
        # ~16-20 MiB actually used; 48 MiB limit is safe on every generation
        # (v7x physical VMEM is 64 MiB, v5e/v6e have 128 MiB).
        vmem_limit_bytes=48 * 1024 * 1024,
    )
    out_shape = jax.ShapeDtypeStruct((nb, 1, 128), jnp.float32)

    if single_pass:
        grid_spec = pltpu.PrefetchScalarGridSpec(
            num_scalar_prefetch=0,
            grid=(nb,),
            in_specs=[
                pl.BlockSpec((tile_b, D), lambda i: (i, 0)),
                pl.BlockSpec((tile_b, D), lambda i: (i, 0)),
                pl.BlockSpec((tile_b, 1), lambda i: (i, 0)),
            ],
            out_specs=pl.BlockSpec((1, 1, 128), lambda i: (i, 0, 0)),
        )
        kernel = functools.partial(_single_pass_kernel, **common)
    else:
        nk = _cdiv(D, tile_d)
        mask_cols = nk * tile_d != D
        grid_spec = pltpu.PrefetchScalarGridSpec(
            num_scalar_prefetch=0,
            grid=(nb, nk),
            in_specs=[
                pl.BlockSpec((tile_b, tile_d), lambda i, k: (i, k)),
                pl.BlockSpec((tile_b, tile_d), lambda i, k: (i, k)),
                pl.BlockSpec((tile_b, 1), lambda i, k: (i, 0)),
            ],
            out_specs=pl.BlockSpec((1, 1, 128), lambda i, k: (i, 0, 0)),
            scratch_shapes=[pltpu.VMEM((tile_b, 128), jnp.float32)],
        )
        kernel = functools.partial(_multi_pass_kernel, true_d=D, tile_d=tile_d,
                                   mask_cols=mask_cols, **common)

    partials = pl.pallas_call(
        kernel,
        out_shape=out_shape,
        grid_spec=grid_spec,
        compiler_params=compiler_params,
    )(x, y, label2d)

    # Tiny final reduction over per-batch-tile partials (each already / B).
    return jnp.sum(partials[:, 0, 0])


def contrastive_loss_ref(x, y, label, *, margin_pos, margin_neg):
    xf = x.astype(jnp.float32)
    yf = y.astype(jnp.float32)
    lab = label.astype(jnp.float32)
    dist = jnp.sqrt(jnp.sum((xf - yf) ** 2, axis=1) + 1e-12)
    return (jnp.mean(lab * jnp.maximum(dist - margin_pos, 0.0))
            + jnp.mean((1.0 - lab) * jnp.maximum(margin_neg - dist, 0.0)))


if __name__ == "__main__":
    # Deterministic "module parameters" (margins from __init__).
    margin_pos = 0.5
    margin_neg = 1.5

    key = jax.random.PRNGKey(0)

    # --- primary small-shape check: single-pass path (TILE_D == D) ---------
    kx, ky, kl = jax.random.split(key, 3)
    B, D = 8, 32
    x = jax.random.normal(kx, (B, D), dtype=jnp.float32)
    y = jax.random.normal(ky, (B, D), dtype=jnp.float32)
    label = jax.random.bernoulli(kl, p=0.5, shape=(B,)).astype(jnp.float32)

    loss = contrastive_loss(x, y, label, margin_pos=margin_pos,
                            margin_neg=margin_neg)
    loss = jax.block_until_ready(loss)
    ref = contrastive_loss_ref(x, y, label, margin_pos=margin_pos,
                               margin_neg=margin_neg)
    assert jnp.allclose(loss, ref, rtol=1e-5, atol=1e-6), (loss, ref)

    # --- secondary check: multi-pass path, ragged B/D, bf16, soft labels ---
    k2x, k2y, k2l = jax.random.split(jax.random.PRNGKey(1), 3)
    B2, D2 = 13, 520
    x2 = jax.random.normal(k2x, (B2, D2), dtype=jnp.bfloat16)
    y2 = jax.random.normal(k2y, (B2, D2), dtype=jnp.bfloat16)
    label2 = jax.random.uniform(k2l, (B2,), dtype=jnp.float32)  # soft labels
    loss2 = contrastive_loss(x2, y2, label2, margin_pos=margin_pos,
                             margin_neg=margin_neg, tile_b=8, tile_d=256)
    loss2 = jax.block_until_ready(loss2)
    ref2 = contrastive_loss_ref(x2, y2, label2, margin_pos=margin_pos,
                                margin_neg=margin_neg)
    assert jnp.allclose(loss2, ref2, rtol=1e-4, atol=1e-5), (loss2, ref2)

    print("KERNEL_OK")
</pallas_src>

<mosaic_0001>
module attributes {stable_mosaic.version = 11 : i64} {
  func.func @_single_pass_kernel(%arg0: i32, %arg1: memref<8x32xf32, #tpu.memory_space<vmem>>, %arg2: memref<8x32xf32, #tpu.memory_space<vmem>>, %arg3: memref<8x1xf32, #tpu.memory_space<vmem>>, %arg4: memref<1x1x128xf32, #tpu.memory_space<vmem>>) attributes {dimension_semantics = [#tpu.dimension_semantics<parallel>], iteration_bounds = array<i64: 1>, scalar_prefetch = 0 : i64, scratch_operands = 0 : i64, tpu.core_type = #tpu.core_type<tc>, window_params = [{transform_indices = @transform_0, window_bounds = array<i64: 8, 32>}, {transform_indices = @transform_1, window_bounds = array<i64: 8, 32>}, {transform_indices = @transform_2, window_bounds = array<i64: 8, 1>}, {transform_indices = @transform_3, window_bounds = array<i64: 1, 1, 128>}]} {
    %c0 = arith.constant 0 : index
    %c0_0 = arith.constant 0 : index
    %0 = vector.load %arg1[%c0, %c0_0] : memref<8x32xf32, #tpu.memory_space<vmem>>, vector<8x32xf32>
    %c0_1 = arith.constant 0 : index
    %c0_2 = arith.constant 0 : index
    %1 = vector.load %arg2[%c0_1, %c0_2] : memref<8x32xf32, #tpu.memory_space<vmem>>, vector<8x32xf32>
    %2 = arith.subf %0, %1 : vector<8x32xf32>
    %3 = arith.mulf %2, %2 : vector<8x32xf32>
    %cst = arith.constant dense<0.000000e+00> : vector<8xf32>
    %4 = vector.multi_reduction <add>, %3, %cst [1] : vector<8x32xf32> to vector<8xf32>
    %5 = vector.shape_cast %4 : vector<8xf32> to vector<8x1xf32>
    %cst_3 = arith.constant 9.99999996E-13 : f32
    %6 = vector.broadcast %cst_3 : f32 to vector<8x1xf32>
    %7 = arith.addf %5, %6 : vector<8x1xf32>
    %8 = math.sqrt %7 : vector<8x1xf32>
    %c0_4 = arith.constant 0 : index
    %c0_5 = arith.constant 0 : index
    %9 = vector.load %arg3[%c0_4, %c0_5] : memref<8x1xf32, #tpu.memory_space<vmem>>, vector<8x1xf32>
    %cst_6 = arith.constant 5.000000e-01 : f32
    %10 = vector.broadcast %cst_6 : f32 to vector<8x1xf32>
    %11 = arith.subf %8, %10 : vector<8x1xf32>
    %cst_7 = arith.constant 0.000000e+00 : f32
    %12 = vector.broadcast %cst_7 : f32 to vector<8x1xf32>
    %13 = arith.maximumf %11, %12 : vector<8x1xf32>
    %14 = arith.mulf %9, %13 : vector<8x1xf32>
    %cst_8 = arith.constant 1.000000e+00 : f32
    %15 = vector.broadcast %cst_8 : f32 to vector<8x1xf32>
    %16 = arith.subf %15, %9 : vector<8x1xf32>
    %cst_9 = arith.constant 1.500000e+00 : f32
    %17 = vector.broadcast %cst_9 : f32 to vector<8x1xf32>
    %18 = arith.subf %17, %8 : vector<8x1xf32>
    %cst_10 = arith.constant 0.000000e+00 : f32
    %19 = vector.broadcast %cst_10 : f32 to vector<8x1xf32>
    %20 = arith.maximumf %18, %19 : vector<8x1xf32>
    %21 = arith.mulf %16, %20 : vector<8x1xf32>
    %22 = arith.addf %14, %21 : vector<8x1xf32>
    %23 = vector.shape_cast %22 : vector<8x1xf32> to vector<1x8x1xf32>
    %cst_11 = arith.constant dense<0.000000e+00> : vector<1xf32>
    %24 = vector.multi_reduction <add>, %23, %cst_11 [1, 2] : vector<1x8x1xf32> to vector<1xf32>
    %25 = vector.shape_cast %24 : vector<1xf32> to vector<1x1x1xf32>
    %26 = vector.extract %25[0, 0, 0] : f32 from vector<1x1x1xf32>
    %cst_12 = arith.constant 1.250000e-01 : f32
    %27 = arith.mulf %26, %cst_12 : f32
    %28 = vector.broadcast %27 : f32 to vector<1x1x128xf32>
    %c0_13 = arith.constant 0 : index
    %c0_14 = arith.constant 0 : index
    %c0_15 = arith.constant 0 : index
    %29 = vector.load %arg4[%c0_13, %c0_14, %c0_15] : memref<1x1x128xf32, #tpu.memory_space<vmem>>, vector<1x1x128xf32>
    tpu.vector_store %arg4[%c0_13, %c0_14, %c0_15], %28 {strides = array<i32>} : memref<1x1x128xf32, #tpu.memory_space<vmem>>, vector<1x1x128xf32>,
    return
  }
  func.func @transform_0(%arg0: i32) -> (i32, i32) {
    %c0_i32 = arith.constant 0 : i32
    %c0_i32_0 = arith.constant 0 : i32
    return %arg0, %c0_i32 : i32, i32
  }
  func.func @transform_1(%arg0: i32) -> (i32, i32) {
    %c0_i32 = arith.constant 0 : i32
    %c0_i32_0 = arith.constant 0 : i32
    return %arg0, %c0_i32 : i32, i32
  }
  func.func @transform_2(%arg0: i32) -> (i32, i32) {
    %c0_i32 = arith.constant 0 : i32
    %c0_i32_0 = arith.constant 0 : i32
    return %arg0, %c0_i32 : i32, i32
  }
  func.func @transform_3(%arg0: i32) -> (i32, i32, i32) {
    %c0_i32 = arith.constant 0 : i32
    %c0_i32_0 = arith.constant 0 : i32
    %c0_i32_1 = arith.constant 0 : i32
    return %arg0, %c0_i32, %c0_i32_0 : i32, i32, i32
  }
}

</mosaic_0001>

<bundles_post_ra>
// kernel: tpu_custom_call.1
= control target key start
LH: loop header
LB: loop body
LE: loop exit
PB: predicated region body
PF: predicated region fallthrough
CT: control target
= control target key end

     0   :  { %8 = vsyncpa [#allocation3], 0  ;;  %s188_s0 = inlined_call_operand.vmem [shape: f32[8,32], index: 0, kind: input, shape index: {}]   ;;  %s189_s1 = inlined_call_operand.hbm [shape: f32[8,32], index: 1, kind: input, shape index: {}]   ;;  %s190_s2 = inlined_call_operand.vmem [shape: f32[8,1], index: 2, kind: input, shape index: {}]   ;;  %s191_s3 = inlined_call_operand.hbm [shape: f32[1,1,128], index: 3, kind: output, shape index: {}]  }
   0x1   :  { %9 = vsyncpa [#allocation4], 0  ;;  %s136_s12 = smov [#allocation2]   ;;  %s88_s16 = scalar_lea.hbm %s189_s1, 128 }
   0x2   :  { %s18_s13 = sshll.u32 %s136_s12, 4  ;;  %p89_p0 = scmp.ne.s32.totalorder %s189_s1, %s88_s16  ;;  %s19_s13 = int_to_ptr.vmem [resolvable:$true] %s18_s13 }
   0x3   :  { %p92_p1 = scmp.lt.u32.totalorder %s88_s16, %s189_s1 }
   0x5   :  { %p94_p2 = pnand %p92_p1, %p89_p0 }
   0x7   :  { %97 = shalt.err (!%p94_p2)
}
   0x8   :  { %s98_s21 = scalar_lea.vmem %s19_s13, 128  ;;  %p103_p4 = scmp.lt.s32.totalorder %s19_s13, %s19_s13 }
   0x9   :  { %p99_p3 = scmp.ne.s32.totalorder %s19_s13, %s98_s21  ;;  %p104_p5 = scmp.lt.s32.totalorder %s98_s21, %s98_s21 }
   0xb   :  { %p105_p6 = por %p104_p5, %p103_p4 }
   0xd   :  { %p106_p7 = pnand %p105_p6, %p99_p3 }
   0xf   :  { %109 = shalt.err (!%p106_p7)
}
  0x10   :  { %21 = dma.hbm_to_vmem [thread:$0]  %s189_s1, 128, %s19_s13, [#allocation3]  }
  0x11   :  { %132 = dma.done.wait [#allocation3], 128  }
  0x12   :  { %133 = vsyncadd [#allocation3], 4294967168  ;;  %v27_v0 = vld [vmem:[%s188_s0] sm:$0xff]  ;;  %vm31_vm0 = vcmask 261120   ;;  %vm52_vm3 = vcmask 7168   ;;  %s137_s0 = smov [#allocation5]  }
  0x13   :  { %v28_v1 = vld [vmem:[#allocation2] sm:$0xff] }
  0x14   :  { %v29_v2 = vsub.f32 %v27_v0, %v28_v1  ;;  %v43_v10 = vld [vmem:[%s190_s2] sm:$0xff]  ;;  %s72_s2 = sshll.u32 %s137_s0, 4  ;;  %s73_s2 = int_to_ptr.vmem [resolvable:$true] %s72_s2 }
  0x15   :  { %v47_v14 = vsub.f32 1.0, %v43_v10  ;;  %s110_s29 = scalar_lea.vmem %s73_s2, 16  ;;  %s114_s30 = scalar_lea.vmem %s73_s2, 32 }
  0x16   :  { %v30_v3 = vmul.f32 %v29_v2, %v29_v2  ;;  %p111_p8 = scmp.ne.s32.totalorder %s73_s2, %s110_s29  ;;  %p115_p9 = scmp.lt.s32.totalorder %s73_s2, %s73_s2 }
  0x17   :  { %p116_p10 = scmp.lt.s32.totalorder %s114_s30, %s110_s29 }
  0x18   :  { %v32_v4 = vsel %vm31_vm0, %v30_v3, 0.0 }
  0x19   :  { %33 = vadd.xlane.f32.xlu0 %v32_v4  ;;  %p117_p11 = por %p116_p10, %p115_p9 }
  0x1b   :  { %p118_p12 = pnand %p117_p11, %p111_p8 }
  0xa6   :  { %v34_v5 = vpop.xlane.xlu0 %33 }
  0xa7   :  { %v35_v6 = vadd.f32 1e-12, %v34_v5 }
  0xa9   :  { %86 = vrsqrt.f32 %v35_v6  ;;  %vm38_vm1 = vcmp.eq.f32.partialorder %v35_v6, inf  ;;  %v41_v9 = vand.u32 2147483648, %v35_v6  ;;  %vm40_vm2 = vcmp.eq.f32.partialorder %v35_v6, 0.0 }
  0xb3   :  { %v87_v7 = vpop.eup %86 }
  0xb4   :  { %v37_v8 = vmul.f32 %v87_v7, %v35_v6 }
  0xb6   :  { %v39_v11 = vsel %vm38_vm1, %v35_v6, %v37_v8 }
  0xb7   :  { %v42_v12 = vsel %vm40_vm2, %v41_v9, %v39_v11 }
  0xb8   :  { %v81_v13 = vadd.f32 -0.5, %v42_v12  ;;  %v48_v15 = vsub.f32 1.5, %v42_v12 }
  0xba   :  { %v45_v16 = vmax.f32 %v81_v13, 0.0  ;;  %v49_v17 = vmax.f32 %v48_v15, 0.0 }
  0xbc   :  { %v46_v18 = vmul.f32 %v45_v16, %v43_v10  ;;  %v50_v19 = vmul.f32 %v49_v17, %v47_v14 }
  0xbe   :  { %v51_v20 = vadd.f32 %v50_v19, %v46_v18 }
  0xc0   :  { %v53_v21 = vsel %vm52_vm3, %v51_v20, 0.0 }
  0xc1   :  { %54 = vadd.xlane.f32.xlu0 %v53_v21 }
 0x14e   :  { %v55_v22 = vpop.xlane.xlu0 %54 }
 0x14f   :  { %v56_v23 = vrot.slane %v55_v22, 4 }
 0x151   :  { %v57_v24 = vadd.f32 %v56_v23, %v55_v22 }
 0x153   :  { %v58_v25 = vrot.slane %v57_v24, 2 }
 0x155   :  { %v59_v26 = vadd.f32 %v58_v25, %v57_v24 }
 0x157   :  { %v60_v27 = vrot.slane %v59_v26, 1 }
 0x159   :  { %v61_v28 = vadd.f32 %v60_v27, %v59_v26 }
 0x15b   :  { %82 = vpush %v61_v28 }
 0x18c   :  { %s83_s27 = spop %82 }
 0x18d   :  { %s63_s28 = smul.f32 0.125, %s83_s27 }
 0x18f   :  { %v64_v29 = vstv %s63_s28 }
 0x190   :  { %65 = vst [vmem:[#allocation5] sm:$0x1] %v64_v29 }
 0x191   :  { %121 = shalt.err (!%p118_p12)
}
 0x192   :  { %s122_s6 = scalar_lea.hbm %s191_s3, 16 }
 0x193   :  { %p123_p13 = scmp.ne.s32.totalorder %s191_s3, %s122_s6  ;;  %p126_p0 = scmp.lt.u32.totalorder %s122_s6, %s191_s3 }
 0x195   :  { %p128_p1 = pnand %p126_p0, %p123_p13 }
 0x197   :  { %131 = shalt.err (!%p128_p1)
}
 0x198   :  { %75 = dma.vmem_to_hbm [thread:$0]  %s73_s2, 16, %s191_s3, [#allocation4]  }
 0x199   :  { %134 = dma.done.wait [#allocation4], 16  }
 0x19a   :  { %135 = vsyncadd [#allocation4], 4294967280 }
 0x19b   :  { %79 = vsyncpa [#allocation3], 1 }
 0x19c   :  { %80 = vsyncpa [#allocation4], 1 }

</bundles_post_ra>
